<compile_context>
chip_gen: v5e
topology: v5e:2x2
jax: 0.10.0
libtpu: 0.0.40
codegen_flags: <defaults>
</compile_context>

<pallas_src>
import functools

import numpy as np
import jax
import jax.numpy as jnp
from jax.experimental import pallas as pl
from jax.experimental.pallas import tpu as pltpu

_MIB = 1024 * 1024


# ---------------------------------------------------------------------------
# Kernels
# ---------------------------------------------------------------------------
def _idct_idxst_resident_kernel(a_ref, x_ref, st_ref, o_ref):
    # o_tile = (A_tile @ x) @ St ; x and St are VMEM-resident (fetched once).
    cdt = a_ref.dtype
    t = jnp.dot(a_ref[...], x_ref[...].astype(cdt),
                preferred_element_type=jnp.float32)
    o = jnp.dot(t.astype(cdt), st_ref[...],
                preferred_element_type=jnp.float32)
    o_ref[...] = o.astype(o_ref.dtype)


def _idct_idxst_streamed_kernel(a_ref, x_ref, st_ref, o_ref, t_ref):
    # Fallback for very large N: St column tiles stream; t = A_tile @ x is
    # computed once per row tile (column index j == 0) and reused across j.
    cdt = a_ref.dtype

    @pl.when(pl.program_id(1) == 0)
    def _():
        t_ref[...] = jnp.dot(
            a_ref[...], x_ref[...].astype(cdt),
            preferred_element_type=jnp.float32
        ).astype(t_ref.dtype)

    o = jnp.dot(t_ref[...], st_ref[...], preferred_element_type=jnp.float32)
    o_ref[...] = o.astype(o_ref.dtype)


# ---------------------------------------------------------------------------
# Helpers
# ---------------------------------------------------------------------------
@functools.lru_cache(maxsize=16)
def _basis_matrices(M, N, compute_dtype):
    # IDCT basis along M: A[u, p] = cos(pi * p * (2u+1) / (2M))
    u = jnp.arange(M, dtype=jnp.float32)
    p = jnp.arange(M, dtype=jnp.float32)
    A = jnp.cos(jnp.pi * p[None, :] * (2.0 * u[:, None] + 1.0) / (2.0 * M))
    # IDXST basis along N (transposed): St[q, v] = sin(pi * q * (2v+1) / (2N))
    v = jnp.arange(N, dtype=jnp.float32)
    q = jnp.arange(N, dtype=jnp.float32)
    St = jnp.sin(jnp.pi * q[:, None] * (2.0 * v[None, :] + 1.0) / (2.0 * N))
    A = jax.block_until_ready(A.astype(compute_dtype))
    St = jax.block_until_ready(St.astype(compute_dtype))
    return A, St


def _pick_tile(size, preferred, align):
    """Largest multiple of `align` that divides `size` and is <= preferred; else `size`."""
    t = min(preferred, size)
    t -= t % align
    while t >= align:
        if size % t == 0:
            return t
        t -= align
    return size  # fall back to the full (untileable) dimension


def _const_block_spec(shape):
    """Constant-index full block; single-buffered when the JAX version supports it."""
    index_map = lambda *_: (0,) * len(shape)
    try:
        return pl.BlockSpec(shape, index_map, pipeline_mode=pl.Buffered(1))
    except (TypeError, AttributeError, ValueError):
        # Older Pallas: fall back to the default (double-buffered) constant block.
        return pl.BlockSpec(shape, index_map)


def _vmem_capacity_bytes():
    try:
        return int(pltpu.get_tpu_info().vmem_capacity_bytes)
    except Exception:
        return 64 * _MIB  # conservative: v7x per-TensorCore VMEM


# ---------------------------------------------------------------------------
# Public entry point
# ---------------------------------------------------------------------------
def idct_idxst(x, *, tm=None, tn=None, compute_dtype=jnp.bfloat16,
               force_streamed=False):
    """IDCT along dim -2, IDXST along dim -1 of a 2D array x of shape (M, N)."""
    M, N = x.shape
    out_dtype = x.dtype

    A, St = _basis_matrices(M, N, compute_dtype)

    cbytes = np.dtype(compute_dtype).itemsize
    xbytes = np.dtype(x.dtype).itemsize
    obytes = np.dtype(out_dtype).itemsize

    vmem_budget = int(0.85 * _vmem_capacity_bytes())

    # Row tile: 256 fills the 256-wide MXU on v6e/v7x, but keep >= 2 row tiles so
    # the "parallel" axis can split across both v7x TensorCores.
    if tm is None:
        preferred_tm = 256 if M >= 512 else max(8, M // 2)
        tm = _pick_tile(M, preferred_tm, 8)
    assert M % tm == 0 and (tm % 8 == 0 or tm == M), "bad row tile"

    def resident_vmem(tm_):
        return (2 * tm_ * M * cbytes      # A row tile (double-buffered)
                + M * N * xbytes          # x (resident, single-buffered, native dtype)
                + N * N * cbytes          # St (resident, single-buffered)
                + 2 * tm_ * N * obytes)   # output row tile (double-buffered)

    use_resident = (not force_streamed) and resident_vmem(tm) <= vmem_budget

    if use_resident:
        grid = (M // tm,)
        kernel = _idct_idxst_resident_kernel
        in_specs = [
            pl.BlockSpec((tm, M), lambda i: (i, 0)),   # A row tile (streams)
            _const_block_spec((M, N)),                 # x, fetched once
            _const_block_spec((N, N)),                 # St, fetched once
        ]
        out_specs = pl.BlockSpec((tm, N), lambda i: (i, 0))
        scratch_shapes = []
        dimension_semantics = ("parallel",)
        operands = (A, x, St)                          # x cast to bf16 in-kernel
        vmem_est = resident_vmem(tm)
        bytes_accessed = (M * M * cbytes + M * N * xbytes
                          + N * N * cbytes + M * N * obytes)
    else:
        # TODO(synk): neither x nor St fits VMEM for extremely large M*N; that
        #             regime would need tiling of the inner contraction dims.
        if tn is None:
            tn = _pick_tile(N, 512, 128)               # lane-dense output columns
        assert N % tn == 0 and (tn % 128 == 0 or tn == N), "bad column tile"
        grid = (M // tm, N // tn)
        kernel = _idct_idxst_streamed_kernel
        xc = x.astype(compute_dtype)                   # halve resident x footprint
        in_specs = [
            pl.BlockSpec((tm, M), lambda i, j: (i, 0)),   # A row tile
            _const_block_spec((M, N)),                    # x, fetched once
            pl.BlockSpec((N, tn), lambda i, j: (0, j)),   # St column tile (streams)
        ]
        out_specs = pl.BlockSpec((tm, tn), lambda i, j: (i, j))
        scratch_shapes = [pltpu.VMEM((tm, N), compute_dtype)]  # t = A_tile @ x
        dimension_semantics = ("parallel", "arbitrary")
        operands = (A, xc, St)
        vmem_est = (2 * tm * M * cbytes + M * N * cbytes + 2 * N * tn * cbytes
                    + 2 * tm * tn * obytes + tm * N * cbytes)
        bytes_accessed = (M * M * cbytes + M * N * cbytes
                          + (M // tm) * N * N * cbytes   # St re-read per row tile
                          + M * N * obytes)

    cost = pl.CostEstimate(
        flops=2 * (M * M * N + M * N * N),
        transcendentals=0,
        bytes_accessed=int(bytes_accessed),
    )

    # Always pass a VMEM limit (v5e default scoped limit is only 16 MiB), with
    # headroom, capped below physical VMEM (64 MiB/TC on v7x).
    vmem_limit = min(max(int(vmem_est * 1.25), 16 * _MIB), vmem_budget)

    return pl.pallas_call(
        kernel,
        out_shape=jax.ShapeDtypeStruct((M, N), out_dtype),
        grid_spec=pltpu.PrefetchScalarGridSpec(
            num_scalar_prefetch=0,
            grid=grid,
            in_specs=in_specs,
            out_specs=out_specs,
            scratch_shapes=scratch_shapes,
        ),
        compiler_params=pltpu.CompilerParams(
            dimension_semantics=dimension_semantics,
            vmem_limit_bytes=vmem_limit,
        ),
        cost_estimate=cost,
    )(*operands)


# ---------------------------------------------------------------------------
# Reference + smoke test
# ---------------------------------------------------------------------------
def _reference_numpy(x):
    # Independent float64 reference of the documented transform.
    M, N = x.shape
    u = np.arange(M, dtype=np.float64)
    p = np.arange(M, dtype=np.float64)
    v = np.arange(N, dtype=np.float64)
    q = np.arange(N, dtype=np.float64)
    A = np.cos(np.pi * p[None, :] * (2.0 * u[:, None] + 1.0) / (2.0 * M))   # (M, M)
    S = np.sin(np.pi * q[None, :] * (2.0 * v[:, None] + 1.0) / (2.0 * N))   # (N, N) = S[v, q]
    return A @ np.asarray(x, dtype=np.float64) @ S.T


if __name__ == "__main__":
    M, N = 256, 256
    key = jax.random.PRNGKey(0)
    x = jax.random.normal(key, (M, N), dtype=jnp.float32)
    ref = _reference_numpy(np.asarray(x))

    # Primary path: x and St VMEM-resident, 1-D row-tile grid (grid = (2,)).
    out = jax.block_until_ready(idct_idxst(x))
    err = np.linalg.norm(np.asarray(out, np.float64) - ref) / np.linalg.norm(ref)
    assert err < 2e-2, f"resident path: relative error too large: {err}"

    # Fallback path (forced): streamed St column tiles + scratch reuse across j.
    out_s = jax.block_until_ready(idct_idxst(x, tn=128, force_streamed=True))
    err_s = np.linalg.norm(np.asarray(out_s, np.float64) - ref) / np.linalg.norm(ref)
    assert err_s < 2e-2, f"streamed path: relative error too large: {err_s}"

    print("KERNEL_OK")
</pallas_src>

<mosaic_0001>
module attributes {stable_mosaic.version = 11 : i64} {
  func.func @_idct_idxst_resident_kernel(%arg0: i32, %arg1: memref<128x256xbf16, #tpu.memory_space<vmem>>, %arg2: memref<256x256xf32, #tpu.memory_space<vmem>>, %arg3: memref<256x256xbf16, #tpu.memory_space<vmem>>, %arg4: memref<128x256xf32, #tpu.memory_space<vmem>>) attributes {dimension_semantics = [#tpu.dimension_semantics<parallel>], iteration_bounds = array<i64: 2>, scalar_prefetch = 0 : i64, scratch_operands = 0 : i64, tpu.core_type = #tpu.core_type<tc>, window_params = [{transform_indices = @transform_0, window_bounds = array<i64: 128, 256>}, {pipeline_mode = #tpu.pipeline_mode<synchronous>, transform_indices = @transform_1, window_bounds = array<i64: 256, 256>}, {pipeline_mode = #tpu.pipeline_mode<synchronous>, transform_indices = @transform_2, window_bounds = array<i64: 256, 256>}, {transform_indices = @transform_3, window_bounds = array<i64: 128, 256>}]} {
    %c0 = arith.constant 0 : index
    %c0_0 = arith.constant 0 : index
    %0 = vector.load %arg1[%c0, %c0_0] : memref<128x256xbf16, #tpu.memory_space<vmem>>, vector<128x256xbf16>
    %c0_1 = arith.constant 0 : index
    %c0_2 = arith.constant 0 : index
    %1 = vector.load %arg2[%c0_1, %c0_2] : memref<256x256xf32, #tpu.memory_space<vmem>>, vector<256x256xf32>
    %2 = arith.truncf %1 : vector<256x256xf32> to vector<256x256xbf16>
    %cst = arith.constant dense<0.000000e+00> : vector<128x256xf32>
    %3 = tpu.matmul %0, %2, %cst {dimension_numbers = #tpu.dot_dimension_numbers<[1], [0], [0], [1], [0, 0, 1, 1], [], []>} : vector<128x256xbf16>, vector<256x256xbf16>, vector<128x256xf32> -> vector<128x256xf32>
    %4 = arith.truncf %3 : vector<128x256xf32> to vector<128x256xbf16>
    %c0_3 = arith.constant 0 : index
    %c0_4 = arith.constant 0 : index
    %5 = vector.load %arg3[%c0_3, %c0_4] : memref<256x256xbf16, #tpu.memory_space<vmem>>, vector<256x256xbf16>
    %cst_5 = arith.constant dense<0.000000e+00> : vector<128x256xf32>
    %6 = tpu.matmul %4, %5, %cst_5 {dimension_numbers = #tpu.dot_dimension_numbers<[1], [0], [0], [1], [0, 0, 1, 1], [], []>} : vector<128x256xbf16>, vector<256x256xbf16>, vector<128x256xf32> -> vector<128x256xf32>
    %c0_6 = arith.constant 0 : index
    %c0_7 = arith.constant 0 : index
    %7 = vector.load %arg4[%c0_6, %c0_7] : memref<128x256xf32, #tpu.memory_space<vmem>>, vector<128x256xf32>
    tpu.vector_store %arg4[%c0_6, %c0_7], %6 {strides = array<i32>} : memref<128x256xf32, #tpu.memory_space<vmem>>, vector<128x256xf32>,
    return
  }
  func.func @transform_0(%arg0: i32) -> (i32, i32) {
    %c0_i32 = arith.constant 0 : i32
    %c0_i32_0 = arith.constant 0 : i32
    return %arg0, %c0_i32 : i32, i32
  }
  func.func @transform_1(%arg0: i32) -> (i32, i32) {
    %c0_i32 = arith.constant 0 : i32
    %c0_i32_0 = arith.constant 0 : i32
    %c0_i32_1 = arith.constant 0 : i32
    return %c0_i32, %c0_i32_0 : i32, i32
  }
  func.func @transform_2(%arg0: i32) -> (i32, i32) {
    %c0_i32 = arith.constant 0 : i32
    %c0_i32_0 = arith.constant 0 : i32
    %c0_i32_1 = arith.constant 0 : i32
    return %c0_i32, %c0_i32_0 : i32, i32
  }
  func.func @transform_3(%arg0: i32) -> (i32, i32) {
    %c0_i32 = arith.constant 0 : i32
    %c0_i32_0 = arith.constant 0 : i32
    return %arg0, %c0_i32 : i32, i32
  }
}

</mosaic_0001>

<bundles_post_ra>
// kernel: tpu_custom_call.1
= control target key start
LH: loop header
LB: loop body
LE: loop exit
PB: predicated region body
PF: predicated region fallthrough
CT: control target
= control target key end

     0   :  { %8 = vsyncpa [#allocation3], 0  ;;  %s1904_s0 = inlined_call_operand.hbm [shape: bf16[256,256], index: 0, kind: input, shape index: {}]   ;;  %s1905_s1 = inlined_call_operand.hbm [shape: f32[256,256], index: 1, kind: input, shape index: {}]   ;;  %s1906_s2 = inlined_call_operand.hbm [shape: bf16[256,256], index: 2, kind: input, shape index: {}]   ;;  %s1907_s3 = inlined_call_operand.hbm [shape: f32[256,256], index: 3, kind: output, shape index: {}]  }
   0x1   :  { %10 = vsyncpa [#allocation3 + $0x1], 0 }
   0x2   :  { %11 = vsyncpa [#allocation6], 0 }
   0x3   :  { %12 = vsyncpa [#allocation4], 0 }
   0x4   :  { %14 = vsyncpa [#allocation4 + $0x1], 0  ;;  %s1687_s12 = smov 0   ;;  %s1689_s13 = smov 0  }
   0x5   :  { %s1691_s14 = smov 0   ;;  %s1693_s15 = smov 0  }
   0x6 LB: > { %s1708_s16 = sadd.s32 4294967295, %s1657_s15   ;;  %s1160_s17 = sadd.s32 4294967294, %s1657_s15   ;;  %s1657_s15 = sphi %s1693_s15, %s1917_s15   ;;  %s1653_s14 = sphi %s1691_s14, %s1916_s14   ;;  %s1649_s13 = sphi %s1689_s13, %s1915_s13   ;;  %s1645_s12 = sphi %s1687_s12, %s1914_s12  }
   0x7   : > { %p40_p0 = scmp.ne.s32.totalorder %s1649_s13, %s1645_s12  ;;  %p41_p1 = scmp.eq.s32.totalorder %s1708_s16, 0 }
   0x8   : > { %p106_p2 = scmp.eq.s32.totalorder %s1708_s16, 1  ;;  %p112_p3 = scmp.eq.s32.totalorder %s1160_s17, 1 }
   0x9   : > { %p1717_p4 = por %p41_p1, %p40_p0  ;;  %p1161_p5 = scmp.ge.s32.totalorder %s1657_s15, 1 }
   0xa   : > { %p1722_p6 = por %p112_p3, %p40_p0  ;;  %p119_p7 = scmp.lt.s32.totalorder %s1657_s15, 3 }
   0xb   : > { %s130_s22 = sshll.u32 %s1905_s1, 4  ;;  %s1659_s24 = smov [#allocation5]   ;;  %s131_s22 = int_to_ptr.hbm [resolvable:$true] %s130_s22 }
   0xc   : > { %p1730_p8 = pnand %p1161_p5, %p119_p7  ;;  %s132_s25 = sshll.u32 %s1659_s24, 4  ;;  %s133_s25 = int_to_ptr.vmem [resolvable:$true] %s132_s25 }
   0xd   : > { %s144_s28 = sshll.u32 %s1906_s2, 4  ;;  %s1660_s29 = smov 256   ;;  %s145_s28 = int_to_ptr.hbm [resolvable:$true] %s144_s28 }
   0xe   : > { %p1436_p9 = pneg %p1730_p8  ;;  %s1661_s30 = smov 16  }
   0xf   : > { %s1662_s4 = smov [#allocation7]   ;;  %s1663_s6 = smov 128  }
  0x10   : > { %p1437_p10 = pnand %p1436_p9, %p41_p1  ;;  %s146_s5 = sshll.u32 %s1662_s4, 4  ;;  %s147_s5 = int_to_ptr.vmem [resolvable:$true] %s146_s5 }
  0x11   : > { %s1664_s7 = smov 8   ;;  %s1746_s8 = sadd.s32 1, %s1657_s15  }
  0x12   : > { %1439 = dma.hbm_to_vmem [thread:$0]  (!%p1437_p10), %s131_s22, 8192, %s133_s25, [#allocation6], %s1660_s29, %s1660_s29, %s1661_s30  }
  0x13   : > { %1442 = dma.hbm_to_vmem [thread:$0]  (!%p1437_p10), %s145_s28, 4096, %s147_s5, [#allocation6], %s1663_s6, %s1663_s6, %s1664_s7  }
  0x14   : > { %s24_s9 = ssub.s32 %s1657_s15, %s1746_s8  ;;  %s27_s10 = sadd.s32 1, %s1653_s14 }
  0x15   : > { %p25_p12 = scmp.eq.s32.totalorder %s24_s9, 0  ;;  %p34_p13 = scmp.ne.s32.totalorder %s1653_s14, %s1649_s13 }
  0x16   : > { %p35_p0 = scmp.eq.s32.totalorder %s1657_s15, 0  ;;  %p1453_p7 = scmp.lt.s32.totalorder %s1657_s15, 2 }
  0x17   : > { %s1755_s11 = scalar_select %p25_p12, %s1653_s14, %s27_s10  }
  0x18   : > { %p36_p3 = por %p35_p0, %p34_p13  ;;  %p1759_p5 = por %p106_p2, %p34_p13 }
  0x19   : > { %s160_s20 = sand.u32 1, %s1653_s14   ;;  %s1373_s22 = sshll.u32 %s1657_s15, 7 }
  0x1a   : > { %s1165_s21 = sshll.u32 %s160_s20, 7  ;;  %s170_s26 = scalar_lea.hbm %s1904_s0, %s1373_s22 }
  0x1b   : > { %s164_s27 = scalar_lea.vmem [#allocation2], %s1165_s21  ;;  %s171_s29 = sshll.u32 %s170_s26, 4  ;;  %s172_s29 = int_to_ptr.hbm [resolvable:$true] %s171_s29 }
  0x1c   : > { %s173_s28 = sshll.u32 %s164_s27, 4  ;;  %p1769_p9 = pnand %p1453_p7, %p36_p3  ;;  %s174_s28 = int_to_ptr.vmem [resolvable:$true] %s173_s28 }
  0x1d   : > { %s161_s4 = scalar_lea.sflag [#allocation3], %s160_s20  ;;  %s1557_s5 = sshra.s32 %s172_s29, 4  ;;  %s1558_s5 = int_to_ptr.hbm [resolvable:$true] %s1557_s5 }
  0x1e   : > { %s1559_s9 = scalar_lea.hbm %s1558_s5, 128  ;;  %p1561_p10 = pneg %p1769_p9 }
  0x1f   : > { %p1560_p2 = scmp.ne.s32.totalorder %s1558_s5, %s1559_s9  ;;  %s1564_s22 = scalar_lea.hbm %s1904_s0, 256 }
  0x20   : > { %p1565_p0 = scmp.lt.s32.totalorder %s1558_s5, %s1904_s0  ;;  %p1566_p3 = scmp.lt.s32.totalorder %s1564_s22, %s1559_s9 }
  0x21   : > { %p1562_p12 = pnand %p1561_p10, %p1560_p2 }
  0x22   : > { %p1567_p7 = por %p1566_p3, %p1565_p0 }
  0x23   : > { %p1563_p13 = pneg %p1562_p12 }
  0x25   : > { %p1568_p11 = pnand %p1567_p7, %p1563_p13 }
  0x27   : > { %1571 = shalt.err (!%p1568_p11)
}
  0x28   : > { %1446 = dma.hbm_to_vmem [thread:$0]  (!%p1769_p9), %s172_s29, 2048, %s174_s28, %s161_s4, %s1663_s6, %s1663_s6, %s1664_s7  }
  0x29   : > { %185 = sbr.rel (%p1730_p8) target bundleno = 488 (0x1e8), region = 32  ;;  %s1789_s20 = sand.u32 (!%p1730_p8), 1, %s1649_s13  }
  0x2a   : > { %s1170_s26 = sshll.u32 (!%p1730_p8), %s1789_s20, 7  ;;  %s188_s27 = scalar_lea.sflag (!%p1730_p8), [#allocation3], %s1789_s20 }
  0x2b   : > { %s1793_s5 = scalar_lea.vmem (!%p1730_p8), [#allocation2], %s1170_s26 }
  0x2e   : > { %1632 = dma.done.wait (%p1717_p4), %s188_s27, 2048  }
  0x2f   : > { %1634 = vsyncadd (%p1717_p4), %s188_s27, 4294965248 }
  0x30   : > { %1636 = dma.done.wait (%p41_p1), [#allocation6], 12288  }
  0x31   : > { %1638 = vsyncadd (%p41_p1), [#allocation6], 4294955008  ;;  %v271_v0 = vld [vmem:[#allocation5 + $0xe0] sm:$0xff]  ;;  %v273_v1 = vld [vmem:[#allocation5 + $0xf0] sm:$0xff]  ;;  %s1173_s18 = sshll.u32 %s1789_s20, 8  ;;  %s1423_s6 = sshll.u32 %s1708_s16, 8 }
  0x32   : > { %v303_v2 = vld [vmem:[#allocation5 + $0x1e0] sm:$0xff]  ;;  %v321_v3 = vpack.c.bf16 %v273_v1, %v271_v0  ;;  %v305_v4 = vld [vmem:[#allocation5 + $0x1f0] sm:$0xff]  ;;  %v272_v5 = vld [vmem:[#allocation5 + $0xe8] sm:$0xff]  ;;  %s1836_s23 = scalar_lea.vmem [#allocation8], %s1173_s18  ;;  %s1064_s29 = scalar_lea.hbm %s1907_s3, %s1423_s6 }
  0x33   : > { %v274_v6 = vld [vmem:[#allocation5 + $0xf8] sm:$0xff]  ;;  %v337_v7 = vpack.c.bf16 %v305_v4, %v303_v2  ;;  %v304_v9 = vld [vmem:[#allocation5 + $0x1e8] sm:$0xff]  ;;  %v267_v11 = vld [vmem:[#allocation5 + $0xc0] sm:$0xff]  ;;  %s1065_s30 = sshll.u32 %s1836_s23, 4  ;;  %s1067_s4 = sshll.u32 %s1064_s29, 4  ;;  %s1066_s30 = int_to_ptr.vmem [resolvable:$true] %s1065_s30  ;;  %s1068_s4 = int_to_ptr.hbm [resolvable:$true] %s1067_s4 }
  0x34   : > { %v322_v8 = vpack.c.bf16 %v274_v6, %v272_v5  ;;  %v306_v10 = vld [vmem:[#allocation5 + $0x1f8] sm:$0xff]  ;;  %419 = vmatpush.bf16.msra.mxu0 %v321_v3  ;;  %v269_v13 = vld [vmem:[#allocation5 + $0xd0] sm:$0xff]  ;;  %v299_v14 = vld [vmem:[#allocation5 + $0x1c0] sm:$0xff]  ;;  %s1052_s16 = scalar_lea.sflag [#allocation4], %s1789_s20  ;;  %s1601_s9 = sshra.s32 %s1068_s4, 4  ;;  %s1602_s9 = int_to_ptr.hbm [resolvable:$true] %s1601_s9 }
  0x35   : > { %v338_v12 = vpack.c.bf16 %v306_v10, %v304_v9  ;;  %v301_v15 = vld [vmem:[#allocation5 + $0x1d0] sm:$0xff]  ;;  %468 = vmatpush.bf16.msra.mxu1 %v337_v7  ;;  %v319_v16 = vpack.c.bf16 %v269_v13, %v267_v11  ;;  %v268_v18 = vld [vmem:[#allocation5 + $0xc8] sm:$0xff]  ;;  %v270_v19 = vld [vmem:[#allocation5 + $0xd8] sm:$0xff]  ;;  %s1603_s10 = scalar_lea.hbm %s1602_s9, 256  ;;  %s1607_s24 = scalar_lea.hbm %s1907_s3, 512 }
  0x36   : > { %517 = vmatpush.bf16.msra.mxu2 %v322_v8  ;;  %v335_v17 = vpack.c.bf16 %v301_v15, %v299_v14  ;;  %v300_v20 = vld [vmem:[#allocation5 + $0x1c8] sm:$0xff]  ;;  %v320_v21 = vpack.c.bf16 %v270_v19, %v268_v18  ;;  %v302_v22 = vld [vmem:[#allocation5 + $0x1d8] sm:$0xff]  ;;  %v263_v23 = vld [vmem:[#allocation5 + $0xa0] sm:$0xff]  ;;  %p1604_p1 = scmp.ne.s32.totalorder %s1602_s9, %s1603_s10  ;;  %p1608_p11 = scmp.lt.s32.totalorder %s1602_s9, %s1907_s3 }
  0x37   : > { %566 = vmatpush.bf16.msra.mxu3 %v338_v12  ;;  %v265_v24 = vld [vmem:[#allocation5 + $0xb0] sm:$0xff]  ;;  %v336_v25 = vpack.c.bf16 %v302_v22, %v300_v20  ;;  %v295_v26 = vld [vmem:[#allocation5 + $0x1a0] sm:$0xff]  ;;  %v264_v28 = vld [vmem:[#allocation5 + $0xa8] sm:$0xff]  ;;  %p1609_p9 = scmp.lt.s32.totalorder %s1607_s24, %s1603_s10 }
  0x38   : > { %v297_v27 = vld [vmem:[#allocation5 + $0x1b0] sm:$0xff]  ;;  %420 = vmatpush.bf16.msra.mxu0 %v319_v16  ;;  %v317_v29 = vpack.c.bf16 %v265_v24, %v263_v23  ;;  %v266_v30 = vld [vmem:[#allocation5 + $0xb8] sm:$0xff]  ;;  %v296_v31 = vld [vmem:[#allocation5 + $0x1a8] sm:$0xff]  ;;  %p1605_p4 = pnand %p1604_p1, %p1759_p5 }
  0x39   : > { %v298_v32 = vld [vmem:[#allocation5 + $0x1b8] sm:$0xff]  ;;  %469 = vmatpush.bf16.msra.mxu1 %v335_v17  ;;  %v333_v33 = vpack.c.bf16 %v297_v27, %v295_v26  ;;  %v318_v34 = vpack.c.bf16 %v266_v30, %v264_v28  ;;  %v259_v35 = vld [vmem:[#allocation5 + $0x80] sm:$0xff]  ;;  %v261_v36 = vld [vmem:[#allocation5 + $0x90] sm:$0xff]  ;;  %p1610_p2 = por %p1609_p9, %p1608_p11 }
  0x3a   : > { %518 = vmatpush.bf16.msra.mxu2 %v320_v21  ;;  %v291_v37 = vld [vmem:[#allocation5 + $0x180] sm:$0xff]  ;;  %v334_v38 = vpack.c.bf16 %v298_v32, %v296_v31  ;;  %v293_v39 = vld [vmem:[#allocation5 + $0x190] sm:$0xff]  ;;  %v260_v40 = vld [vmem:[#allocation5 + $0x88] sm:$0xff]  ;;  %v315_v44 = vpack.c.bf16 %v261_v36, %v259_v35  ;;  %p1606_p8 = pneg %p1605_p4 }
  0x3b   : > { %567 = vmatpush.bf16.msra.mxu3 %v336_v25  ;;  %v262_v41 = vld [vmem:[#allocation5 + $0x98] sm:$0xff]  ;;  %v292_v42 = vld [vmem:[#allocation5 + $0x188] sm:$0xff]  ;;  %v331_v45 = vpack.c.bf16 %v293_v39, %v291_v37  ;;  %v255_v47 = vld [vmem:[#allocation5 + $0x60] sm:$0xff] }
  0x3c   : > { %v294_v43 = vld [vmem:[#allocation5 + $0x198] sm:$0xff]  ;;  %421 = vmatpush.bf16.msra.mxu0 %v317_v29  ;;  %v316_v46 = vpack.c.bf16 %v262_v41, %v260_v40  ;;  %v257_v48 = vld [vmem:[#allocation5 + $0x70] sm:$0xff]  ;;  %v287_v49 = vld [vmem:[#allocation5 + $0x160] sm:$0xff]  ;;  %p1611_p10 = pnand %p1610_p2, %p1606_p8 }
  0x3d   : > { %470 = vmatpush.bf16.msra.mxu1 %v333_v33  ;;  %v332_v50 = vpack.c.bf16 %v294_v43, %v292_v42  ;;  %v289_v51 = vld [vmem:[#allocation5 + $0x170] sm:$0xff]  ;;  %v256_v52 = vld [vmem:[#allocation5 + $0x68] sm:$0xff]  ;;  %v258_v53 = vld [vmem:[#allocation5 + $0x78] sm:$0xff]  ;;  %v313_v56 = vpack.c.bf16 %v257_v48, %v255_v47 }
  0x3e   : > { %519 = vmatpush.bf16.msra.mxu2 %v318_v34  ;;  %v288_v54 = vld [vmem:[#allocation5 + $0x168] sm:$0xff]  ;;  %v290_v55 = vld [vmem:[#allocation5 + $0x178] sm:$0xff]  ;;  %v329_v57 = vpack.c.bf16 %v289_v51, %v287_v49  ;;  %v314_v58 = vpack.c.bf16 %v258_v53, %v256_v52  ;;  %v251_v59 = vld [vmem:[#allocation5 + $0x40] sm:$0xff] }
  0x3f   : > { %568 = vmatpush.bf16.msra.mxu3 %v334_v38  ;;  %v253_v60 = vld [vmem:[#allocation5 + $0x50] sm:$0xff]  ;;  %v283_v61 = vld [vmem:[#allocation5 + $0x140] sm:$0xff]  ;;  %v330_v62 = vpack.c.bf16 %v290_v55, %v288_v54  ;;  %v252_v0 = vld [vmem:[#allocation5 + $0x48] sm:$0xff] }
  0x40   : > { %422 = vmatpush.bf16.msra.mxu0 %v315_v44  ;;  %v285_v63 = vld [vmem:[#allocation5 + $0x150] sm:$0xff]  ;;  %v254_v1 = vld [vmem:[#allocation5 + $0x58] sm:$0xff]  ;;  %v284_v2 = vld [vmem:[#allocation5 + $0x148] sm:$0xff]  ;;  %v311_v4 = vpack.c.bf16 %v253_v60, %v251_v59 }
  0x41   : > { %471 = vmatpush.bf16.msra.mxu1 %v331_v45  ;;  %v286_v3 = vld [vmem:[#allocation5 + $0x158] sm:$0xff]  ;;  %v327_v5 = vpack.c.bf16 %v285_v63, %v283_v61  ;;  %v312_v6 = vpack.c.bf16 %v254_v1, %v252_v0  ;;  %v247_v7 = vld [vmem:[#allocation5 + $0x20] sm:$0xff]  ;;  %v249_v8 = vld [vmem:[#allocation5 + $0x30] sm:$0xff] }
  0x42   : > { %520 = vmatpush.bf16.msra.mxu2 %v316_v46  ;;  %v279_v9 = vld [vmem:[#allocation5 + $0x120] sm:$0xff]  ;;  %v328_v10 = vpack.c.bf16 %v286_v3, %v284_v2  ;;  %v281_v11 = vld [vmem:[#allocation5 + $0x130] sm:$0xff]  ;;  %v248_v12 = vld [vmem:[#allocation5 + $0x28] sm:$0xff]  ;;  %v309_v16 = vpack.c.bf16 %v249_v8, %v247_v7 }
  0x43   : > { %569 = vmatpush.bf16.msra.mxu3 %v332_v50  ;;  %v250_v13 = vld [vmem:[#allocation5 + $0x38] sm:$0xff]  ;;  %v280_v14 = vld [vmem:[#allocation5 + $0x128] sm:$0xff]  ;;  %v243_v17 = vld [vmem:[#allocation5] sm:$0xff]  ;;  %v325_v19 = vpack.c.bf16 %v281_v11, %v279_v9 }
  0x44   : > { %423 = vmatpush.bf16.msra.mxu0 %v313_v56  ;;  %v282_v15 = vld [vmem:[#allocation5 + $0x138] sm:$0xff]  ;;  %v245_v18 = vld [vmem:[#allocation5 + $0x10] sm:$0xff]  ;;  %v310_v20 = vpack.c.bf16 %v250_v13, %v248_v12  ;;  %v275_v21 = vld [vmem:[#allocation5 + $0x100] sm:$0xff] }
  0x45   : > { %472 = vmatpush.bf16.msra.mxu1 %v329_v57  ;;  %v277_v22 = vld [vmem:[#allocation5 + $0x110] sm:$0xff]  ;;  %v244_v23 = vld [vmem:[#allocation5 + $0x8] sm:$0xff]  ;;  %v326_v24 = vpack.c.bf16 %v282_v15, %v280_v14  ;;  %v246_v25 = vld [vmem:[#allocation5 + $0x18] sm:$0xff]  ;;  %v307_v31 = vpack.c.bf16 %v245_v18, %v243_v17 }
  0x46   : > { %521 = vmatpush.bf16.msra.mxu2 %v314_v58  ;;  %v276_v26 = vld [vmem:[#allocation5 + $0x108] sm:$0xff]  ;;  %v278_v27 = vld [vmem:[#allocation5 + $0x118] sm:$0xff]  ;;  %v1176_v28 = vld [vmem:[%s1793_s5] sm:$0xf]  ;;  %v323_v35 = vpack.c.bf16 %v277_v22, %v275_v21  ;;  %v308_v36 = vpack.c.bf16 %v246_v25, %v244_v23 }
  0x47   : > { %570 = vmatpush.bf16.msra.mxu3 %v330_v62  ;;  %v1404_v29 = vld [vmem:[#allocation7 + $0x74] sm:$0xf]  ;;  %v1298_v30 = vld [vmem:[#allocation7 + $0x78] sm:$0xf0]  ;;  %v1375_v32 = vld [vmem:[%s1793_s5 + $0x4] sm:$0xf0]  ;;  %v324_v39 = vpack.c.bf16 %v278_v27, %v276_v26 }
  0x48   : > { %424 = vmatpush.bf16.msra.mxu0 %v311_v4  ;;  %v1420_v33 = vld [vmem:[#allocation7 + $0xf4] sm:$0xf]  ;;  %v1362_v34 = vld [vmem:[#allocation7 + $0xf8] sm:$0xf0]  ;;  %v1374_v37 = vld [vmem:[%s1793_s5 + $0x4] sm:$0xf]  ;;  %v1301_v40 = vor.u32 %v1404_v29, %v1298_v30  ;;  %v1177_v43 = vor.u32 %v1375_v32, %v1176_v28 }
  0x49   : > { %473 = vmatpush.bf16.msra.mxu1 %v327_v5  ;;  %v1178_v38 = vld [vmem:[%s1793_s5 + $0x8] sm:$0xf0]  ;;  %v1296_v41 = vld [vmem:[#allocation7 + $0x70] sm:$0xf]  ;;  %v1405_v42 = vld [vmem:[#allocation7 + $0x74] sm:$0xf0]  ;;  %v1365_v44 = vor.u32 %v1420_v33, %v1362_v34 }
  0x4a   : > { %522 = vmatpush.bf16.msra.mxu2 %v312_v6  ;;  %v1360_v45 = vld [vmem:[#allocation7 + $0xf0] sm:$0xf]  ;;  %v1421_v46 = vld [vmem:[#allocation7 + $0xf4] sm:$0xf0]  ;;  %v1181_v47 = vor.u32 %v1374_v37, %v1178_v38  ;;  %v1297_v48 = vor.u32 %v1405_v42, %v1296_v41  ;;  %v1402_v50 = vld [vmem:[#allocation7 + $0x64] sm:$0xf] }
  0x4b   : > { %571 = vmatpush.bf16.msra.mxu3 %v328_v10  ;;  %v1361_v49 = vor.u32 %v1421_v46, %v1360_v45  ;;  %v1290_v51 = vld [vmem:[#allocation7 + $0x68] sm:$0xf0]  ;;  %v1418_v52 = vld [vmem:[#allocation7 + $0xe4] sm:$0xf]  ;;  %v1288_v55 = vld [vmem:[#allocation7 + $0x60] sm:$0xf] }
  0x4c   : > { %425 = vmatpush.bf16.msra.mxu0 %v309_v16  ;;  %v1293_v53 = vor.u32 %v1402_v50, %v1290_v51  ;;  %v1354_v54 = vld [vmem:[#allocation7 + $0xe8] sm:$0xf0]  ;;  %v1403_v56 = vld [vmem:[#allocation7 + $0x64] sm:$0xf0]  ;;  %v1352_v59 = vld [vmem:[#allocation7 + $0xe0] sm:$0xf] }
  0x4d   : > { %474 = vmatpush.bf16.msra.mxu1 %v325_v19  ;;  %v1357_v57 = vor.u32 %v1418_v52, %v1354_v54  ;;  %v1289_v58 = vor.u32 %v1403_v56, %v1288_v55  ;;  %v1419_v60 = vld [vmem:[#allocation7 + $0xe4] sm:$0xf0]  ;;  %v1184_v62 = vld [vmem:[%s1793_s5 + $0x10] sm:$0xf]  ;;  %v1377_v63 = vld [vmem:[%s1793_s5 + $0x14] sm:$0xf0] }
  0x4e   : > { %523 = vmatpush.bf16.msra.mxu2 %v310_v20  ;;  %v1353_v61 = vor.u32 %v1419_v60, %v1352_v59  ;;  %v1376_v0 = vld [vmem:[%s1793_s5 + $0x14] sm:$0xf]  ;;  %v1186_v1 = vld [vmem:[%s1793_s5 + $0x18] sm:$0xf0]  ;;  %v1185_v2 = vor.u32 %v1377_v63, %v1184_v62  ;;  %v1280_v9 = vld [vmem:[#allocation7 + $0x50] sm:$0xf] }
  0x4f   : > { %572 = vmatpush.bf16.msra.mxu3 %v326_v24  ;;  %v1189_v3 = vor.u32 %v1376_v0, %v1186_v1  ;;  %v1400_v4 = vld [vmem:[#allocation7 + $0x54] sm:$0xf]  ;;  %v1282_v5 = vld [vmem:[#allocation7 + $0x58] sm:$0xf0]  ;;  %v1401_v10 = vld [vmem:[#allocation7 + $0x54] sm:$0xf0] }
  0x50   : > { %426 = vmatpush.bf16.msra.mxu0 %v307_v31  ;;  %v1416_v6 = vld [vmem:[#allocation7 + $0xd4] sm:$0xf]  ;;  %v1285_v7 = vor.u32 %v1400_v4, %v1282_v5  ;;  %v1346_v8 = vld [vmem:[#allocation7 + $0xd8] sm:$0xf0]  ;;  %v1281_v12 = vor.u32 %v1401_v10, %v1280_v9  ;;  %v1344_v13 = vld [vmem:[#allocation7 + $0xd0] sm:$0xf] }
  0x51   : > { %475 = vmatpush.bf16.msra.mxu1 %v323_v35  ;;  %v1349_v11 = vor.u32 %v1416_v6, %v1346_v8  ;;  %v1417_v14 = vld [vmem:[#allocation7 + $0xd4] sm:$0xf0]  ;;  %v1192_v16 = vld [vmem:[%s1793_s5 + $0x20] sm:$0xf]  ;;  %v1379_v17 = vld [vmem:[%s1793_s5 + $0x24] sm:$0xf0] }
  0x52   : > { %524 = vmatpush.bf16.msra.mxu2 %v308_v36  ;;  %v1345_v15 = vor.u32 %v1417_v14, %v1344_v13  ;;  %v1378_v18 = vld [vmem:[%s1793_s5 + $0x24] sm:$0xf]  ;;  %v1194_v19 = vld [vmem:[%s1793_s5 + $0x28] sm:$0xf0]  ;;  %v1193_v20 = vor.u32 %v1379_v17, %v1192_v16  ;;  %v1272_v27 = vld [vmem:[#allocation7 + $0x40] sm:$0xf] }
  0x53   : > { %573 = vmatpush.bf16.msra.mxu3 %v324_v39  ;;  %427 = vmatmul.bf16.vlgmr.msra.gmra.mxu0 %v1177_v43  ;;  %v1197_v21 = vor.u32 %v1378_v18, %v1194_v19  ;;  %v1398_v22 = vld [vmem:[#allocation7 + $0x44] sm:$0xf]  ;;  %v1274_v23 = vld [vmem:[#allocation7 + $0x48] sm:$0xf0]  ;;  %v1399_v28 = vld [vmem:[#allocation7 + $0x44] sm:$0xf0] }
  0x54   : > { %476 = vmatmul.bf16.vlgmr.msra.gmra.mxu1 %v1181_v47  ;;  %823 = vmatpush.bf16.msrb.mxu0 %v1297_v48  ;;  %v1414_v24 = vld [vmem:[#allocation7 + $0xc4] sm:$0xf]  ;;  %v1277_v25 = vor.u32 %v1398_v22, %v1274_v23  ;;  %v1338_v26 = vld [vmem:[#allocation7 + $0xc8] sm:$0xf0]  ;;  %v1273_v30 = vor.u32 %v1399_v28, %v1272_v27  ;;  %v1336_v31 = vld [vmem:[#allocation7 + $0xc0] sm:$0xf] }
  0x55   : > { %525 = vmatmul.bf16.vlgmr.msra.gmra.mxu2 %v1177_v43  ;;  %872 = vmatpush.bf16.msrb.mxu1 %v1361_v49  ;;  %v1341_v29 = vor.u32 %v1414_v24, %v1338_v26  ;;  %v1415_v32 = vld [vmem:[#allocation7 + $0xc4] sm:$0xf0]  ;;  %v1200_v34 = vld [vmem:[%s1793_s5 + $0x30] sm:$0xf]  ;;  %v1381_v35 = vld [vmem:[%s1793_s5 + $0x34] sm:$0xf0] }
  0x56   : > { %921 = vmatpush.bf16.msrb.mxu2 %v1301_v40  ;;  %574 = vmatmul.bf16.vlgmr.msra.gmra.mxu3 %v1181_v47  ;;  %v1337_v33 = vor.u32 %v1415_v32, %v1336_v31  ;;  %v1380_v36 = vld [vmem:[%s1793_s5 + $0x34] sm:$0xf]  ;;  %v1202_v37 = vld [vmem:[%s1793_s5 + $0x38] sm:$0xf0]  ;;  %v1201_v38 = vor.u32 %v1381_v35, %v1200_v34  ;;  %v1264_v45 = vld [vmem:[#allocation7 + $0x30] sm:$0xf] }
  0x57   : > { %970 = vmatpush.bf16.msrb.mxu3 %v1365_v44  ;;  %v1205_v39 = vor.u32 %v1380_v36, %v1202_v37  ;;  %v1396_v40 = vld [vmem:[#allocation7 + $0x34] sm:$0xf]  ;;  %v1266_v41 = vld [vmem:[#allocation7 + $0x38] sm:$0xf0]  ;;  %v1397_v46 = vld [vmem:[#allocation7 + $0x34] sm:$0xf0] }
  0x58   : > { %824 = vmatpush.bf16.msrb.mxu0 %v1289_v58  ;;  %v1412_v42 = vld [vmem:[#allocation7 + $0xb4] sm:$0xf]  ;;  %v1269_v43 = vor.u32 %v1396_v40, %v1266_v41  ;;  %v1330_v44 = vld [vmem:[#allocation7 + $0xb8] sm:$0xf0]  ;;  %v1265_v48 = vor.u32 %v1397_v46, %v1264_v45  ;;  %v1328_v49 = vld [vmem:[#allocation7 + $0xb0] sm:$0xf] }
  0x59   : > { %873 = vmatpush.bf16.msrb.mxu1 %v1353_v61  ;;  %v1333_v47 = vor.u32 %v1412_v42, %v1330_v44  ;;  %v1413_v50 = vld [vmem:[#allocation7 + $0xb4] sm:$0xf0]  ;;  %v1208_v52 = vld [vmem:[%s1793_s5 + $0x40] sm:$0xf]  ;;  %v1382_v54 = vld [vmem:[%s1793_s5 + $0x44] sm:$0xf] }
  0x5a   : > { %922 = vmatpush.bf16.msrb.mxu2 %v1293_v53  ;;  %v1329_v51 = vor.u32 %v1413_v50, %v1328_v49  ;;  %v1383_v53 = vld [vmem:[%s1793_s5 + $0x44] sm:$0xf0]  ;;  %v1210_v55 = vld [vmem:[%s1793_s5 + $0x48] sm:$0xf0]  ;;  %v1394_v58 = vld [vmem:[#allocation7 + $0x24] sm:$0xf] }
  0x5b   : > { %971 = vmatpush.bf16.msrb.mxu3 %v1357_v57  ;;  %v1209_v56 = vor.u32 %v1383_v53, %v1208_v52  ;;  %v1213_v57 = vor.u32 %v1382_v54, %v1210_v55  ;;  %v1258_v59 = vld [vmem:[#allocation7 + $0x28] sm:$0xf0]  ;;  %v1410_v60 = vld [vmem:[#allocation7 + $0xa4] sm:$0xf]  ;;  %v1256_v63 = vld [vmem:[#allocation7 + $0x20] sm:$0xf] }
  0x5c   : > { %825 = vmatpush.bf16.msrb.mxu0 %v1281_v12  ;;  %v1261_v61 = vor.u32 %v1394_v58, %v1258_v59  ;;  %v1322_v62 = vld [vmem:[#allocation7 + $0xa8] sm:$0xf0]  ;;  %v1395_v0 = vld [vmem:[#allocation7 + $0x24] sm:$0xf0]  ;;  %v1216_v6 = vld [vmem:[%s1793_s5 + $0x50] sm:$0xf] }
  0x5d   : > { %874 = vmatpush.bf16.msrb.mxu1 %v1345_v15  ;;  %v1325_v1 = vor.u32 %v1410_v60, %v1322_v62  ;;  %v1411_v4 = vld [vmem:[#allocation7 + $0xa4] sm:$0xf0]  ;;  %v1384_v8 = vld [vmem:[%s1793_s5 + $0x54] sm:$0xf]  ;;  %v1218_v9 = vld [vmem:[%s1793_s5 + $0x58] sm:$0xf0] }
  0x5e   : > { %923 = vmatpush.bf16.msrb.mxu2 %v1285_v7  ;;  %v1385_v7 = vld [vmem:[%s1793_s5 + $0x54] sm:$0xf0]  ;;  %v1392_v12 = vld [vmem:[#allocation7 + $0x14] sm:$0xf]  ;;  %v1250_v13 = vld [vmem:[#allocation7 + $0x18] sm:$0xf0] }
  0x5f   : > { %972 = vmatpush.bf16.msrb.mxu3 %v1349_v11  ;;  %v1217_v10 = vor.u32 %v1385_v7, %v1216_v6  ;;  %v1221_v11 = vor.u32 %v1384_v8, %v1218_v9  ;;  %v1408_v14 = vld [vmem:[#allocation7 + $0x94] sm:$0xf]  ;;  %v1253_v15 = vor.u32 %v1392_v12, %v1250_v13  ;;  %v1314_v16 = vld [vmem:[#allocation7 + $0x98] sm:$0xf0]  ;;  %v1248_v17 = vld [vmem:[#allocation7 + $0x10] sm:$0xf] }
  0x60   : > { %826 = vmatpush.bf16.msrb.mxu0 %v1273_v30  ;;  %v1393_v18 = vld [vmem:[#allocation7 + $0x14] sm:$0xf0]  ;;  %v1317_v19 = vor.u32 %v1408_v14, %v1314_v16  ;;  %v1224_v24 = vld [vmem:[%s1793_s5 + $0x60] sm:$0xf]  ;;  %v1386_v26 = vld [vmem:[%s1793_s5 + $0x64] sm:$0xf] }
  0x61   : > { %875 = vmatpush.bf16.msrb.mxu1 %v1337_v33  ;;  %v1409_v22 = vld [vmem:[#allocation7 + $0x94] sm:$0xf0]  ;;  %v1226_v27 = vld [vmem:[%s1793_s5 + $0x68] sm:$0xf0]  ;;  %v1390_v30 = vld [vmem:[#allocation7 + $0x4] sm:$0xf] }
  0x62   : > { %924 = vmatpush.bf16.msrb.mxu2 %v1277_v25  ;;  %v1387_v25 = vld [vmem:[%s1793_s5 + $0x64] sm:$0xf0]  ;;  %v1242_v31 = vld [vmem:[#allocation7 + $0x8] sm:$0xf0]  ;;  %v1406_v32 = vld [vmem:[#allocation7 + $0x84] sm:$0xf] }
  0x63   : > { %432 = vmatmul.bf16.gmra.mxu0 %v1185_v2  ;;  %973 = vmatpush.bf16.msrb.mxu3 %v1341_v29  ;;  %v1225_v28 = vor.u32 %v1387_v25, %v1224_v24  ;;  %v1229_v29 = vor.u32 %v1386_v26, %v1226_v27  ;;  %v1245_v33 = vor.u32 %v1390_v30, %v1242_v31  ;;  %v1306_v34 = vld [vmem:[#allocation7 + $0x88] sm:$0xf0]  ;;  %v1240_v36 = vld [vmem:[#allocation7] sm:$0xf]  ;;  %v1391_v37 = vld [vmem:[#allocation7 + $0x4] sm:$0xf0] }
  0x64   : > { %481 = vmatmul.bf16.gmra.mxu1 %v1189_v3  ;;  %827 = vmatpush.bf16.msrb.mxu0 %v1265_v48  ;;  %v1309_v35 = vor.u32 %v1406_v32, %v1306_v34  ;;  %v1389_v40 = vld [vmem:[%s1793_s5 + $0x74] sm:$0xf0]  ;;  %v1304_v41 = vld [vmem:[#allocation7 + $0x80] sm:$0xf]  ;;  %v1407_v42 = vld [vmem:[#allocation7 + $0x84] sm:$0xf0] }
  0x65   : > { %530 = vmatmul.bf16.gmra.mxu2 %v1185_v2  ;;  %876 = vmatpush.bf16.msrb.mxu1 %v1329_v51  ;;  %v1257_v2 = vor.u32 %v1395_v0, %v1256_v63  ;;  %v1234_v44 = vld [vmem:[%s1793_s5 + $0x78] sm:$0xf0]  ;;  %v1305_v45 = vor.u32 %v1407_v42, %v1304_v41 }
  0x66   : > { %579 = vmatmul.bf16.gmra.mxu3 %v1189_v3  ;;  %925 = vmatpush.bf16.msrb.mxu2 %v1269_v43  ;;  %v1320_v3 = vld [vmem:[#allocation7 + $0xa0] sm:$0xf]  ;;  %v1388_v43 = vld [vmem:[%s1793_s5 + $0x74] sm:$0xf] }
  0x67   : > { %974 = vmatpush.bf16.msrb.mxu3 %v1333_v47  ;;  %v1321_v5 = vor.u32 %v1411_v4, %v1320_v3  ;;  %v1237_v47 = vor.u32 %v1388_v43, %v1234_v44 }
  0x68   : > { %828 = vmatpush.bf16.msrb.mxu0 %v1257_v2 }
  0x69   : > { %877 = vmatpush.bf16.msrb.mxu1 %v1321_v5 }
  0x6a   : > { %926 = vmatpush.bf16.msrb.mxu2 %v1261_v61 }
  0x6b   : > { %975 = vmatpush.bf16.msrb.mxu3 %v1325_v1 }
  0x6e   : > { %927 = vmatpush.bf16.msrb.mxu2 %v1253_v15 }
  0x6f   : > { %976 = vmatpush.bf16.msrb.mxu3 %v1317_v19 }
  0x72   : > { %928 = vmatpush.bf16.msrb.mxu2 %v1245_v33 }
  0x73   : > { %437 = vmatmul.bf16.gmra.mxu0 %v1193_v20  ;;  %977 = vmatpush.bf16.msrb.mxu3 %v1309_v35 }
  0x74   : > { %486 = vmatmul.bf16.gmra.mxu1 %v1197_v21 }
  0x75   : > { %535 = vmatmul.bf16.gmra.mxu2 %v1193_v20  ;;  %v1249_v20 = vor.u32 %v1393_v18, %v1248_v17 }
  0x76   : > { %584 = vmatmul.bf16.gmra.mxu3 %v1197_v21  ;;  %v1312_v21 = vld [vmem:[#allocation7 + $0x90] sm:$0xf] }
  0x77   : > { %v1313_v23 = vor.u32 %v1409_v22, %v1312_v21  ;;  %829 = vmatpush.bf16.msrb.mxu0 %v1249_v20 }
  0x79   : > { %878 = vmatpush.bf16.msrb.mxu1 %v1313_v23 }
  0x7d   : > { %879 = vmatpush.bf16.msrb.mxu1 %v1305_v45 }
  0x83   : > { %442 = vmatmul.bf16.gmra.mxu0 %v1201_v38 }
  0x84   : > { %491 = vmatmul.bf16.gmra.mxu1 %v1205_v39 }
  0x85   : > { %540 = vmatmul.bf16.gmra.mxu2 %v1201_v38  ;;  %v1241_v38 = vor.u32 %v1391_v37, %v1240_v36 }
  0x86   : > { %589 = vmatmul.bf16.gmra.mxu3 %v1205_v39  ;;  %v1232_v39 = vld [vmem:[%s1793_s5 + $0x70] sm:$0xf] }
  0x87   : > { %830 = vmatpush.bf16.msrb.mxu0 %v1241_v38  ;;  %v1233_v46 = vor.u32 %v1389_v40, %v1232_v39 }
  0x93   : > { %447 = vmatmul.bf16.gmra.mxu0 %v1209_v56 }
  0x94   : > { %496 = vmatmul.bf16.gmra.mxu1 %v1213_v57 }
  0x95   : > { %545 = vmatmul.bf16.gmra.mxu2 %v1209_v56 }
  0x96   : > { %594 = vmatmul.bf16.gmra.mxu3 %v1213_v57 }
  0xa3   : > { %452 = vmatmul.bf16.gmra.mxu0 %v1217_v10 }
  0xa4   : > { %501 = vmatmul.bf16.gmra.mxu1 %v1221_v11 }
  0xa5   : > { %550 = vmatmul.bf16.gmra.mxu2 %v1217_v10 }
  0xa6   : > { %599 = vmatmul.bf16.gmra.mxu3 %v1221_v11 }
  0xb3   : > { %457 = vmatmul.bf16.gmra.mxu0 %v1225_v28 }
  0xb4   : > { %506 = vmatmul.bf16.gmra.mxu1 %v1229_v29 }
  0xb5   : > { %555 = vmatmul.bf16.gmra.mxu2 %v1225_v28 }
  0xb6   : > { %604 = vmatmul.bf16.gmra.mxu3 %v1229_v29 }
  0xc3   : > { %462 = vmatmul.bf16.gmra.mxu0 %v1233_v46 }
  0xc4   : > { %511 = vmatmul.bf16.gmra.mxu1 %v1237_v47 }
  0xc5   : > { %560 = vmatmul.bf16.gmra.mxu2 %v1233_v46 }
  0xc6   : > { %609 = vmatmul.bf16.gmra.mxu3 %v1237_v47 }
  0xd0   : > { %v428_v48 = vpop.f32.mrf.mxu0 }
  0xd1   : > { %v477_v49 = vpop.f32.mrf.mxu1 }
  0xd2   : > { %v478_v54 = vadd.f32 %v477_v49, %v428_v48 }
  0xd8   : > { %v526_v50 = vpop.f32.mrf.mxu2  ;;  %v430_v52 = vpop.f32.mrf.mxu0 }
  0xd9   : > { %v575_v51 = vpop.f32.mrf.mxu3  ;;  %v479_v53 = vpop.f32.mrf.mxu1 }
  0xda   : > { %v480_v55 = vadd.f32 %v479_v53, %v430_v52  ;;  %v576_v60 = vadd.f32 %v575_v51, %v526_v50 }
  0xdc   : > { %v615_v56 = vpack.c.bf16 %v480_v55, %v478_v54 }
  0xde   : > { %831 = vmatmul.bf16.vlgmr.msrb.gmra.mxu0 %v615_v56  ;;  %929 = vmatmul.bf16.vlgmr.msrb.gmra.mxu2 %v615_v56 }
  0xe0   : > { %v528_v57 = vpop.f32.mrf.mxu2  ;;  %v433_v59 = vpop.f32.mrf.mxu0 }
  0xe1   : > { %v577_v58 = vpop.f32.mrf.mxu3  ;;  %v482_v62 = vpop.f32.mrf.mxu1 }
  0xe2   : > { %v578_v61 = vadd.f32 %v577_v58, %v528_v57  ;;  %v483_v4 = vadd.f32 %v482_v62, %v433_v59 }
  0xe4   : > { %v616_v63 = vpack.c.bf16 %v578_v61, %v576_v60 }
  0xe6   : > { %880 = vmatmul.bf16.vlgmr.msrb.gmra.mxu1 %v616_v63  ;;  %978 = vmatmul.bf16.vlgmr.msrb.gmra.mxu3 %v616_v63 }
  0xe8   : > { %v531_v0 = vpop.f32.mrf.mxu2  ;;  %v435_v2 = vpop.f32.mrf.mxu0 }
  0xe9   : > { %v580_v1 = vpop.f32.mrf.mxu3  ;;  %v484_v3 = vpop.f32.mrf.mxu1 }
  0xea   : > { %v485_v5 = vadd.f32 %v484_v3, %v435_v2  ;;  %v581_v10 = vadd.f32 %v580_v1, %v531_v0 }
  0xec   : > { %v617_v6 = vpack.c.bf16 %v485_v5, %v483_v4 }
  0xee   : > { %836 = vmatmul.bf16.gmra.mxu0 %v617_v6  ;;  %934 = vmatmul.bf16.gmra.mxu2 %v617_v6 }
  0xf0   : > { %v533_v7 = vpop.f32.mrf.mxu2  ;;  %v438_v9 = vpop.f32.mrf.mxu0 }
  0xf1   : > { %v582_v8 = vpop.f32.mrf.mxu3  ;;  %v487_v12 = vpop.f32.mrf.mxu1 }
  0xf2   : > { %v583_v11 = vadd.f32 %v582_v8, %v533_v7  ;;  %v488_v18 = vadd.f32 %v487_v12, %v438_v9 }
  0xf4   : > { %v618_v13 = vpack.c.bf16 %v583_v11, %v581_v10 }
  0xf6   : > { %885 = vmatmul.bf16.gmra.mxu1 %v618_v13  ;;  %983 = vmatmul.bf16.gmra.mxu3 %v618_v13 }
  0xf8   : > { %v536_v14 = vpop.f32.mrf.mxu2  ;;  %v440_v16 = vpop.f32.mrf.mxu0 }
  0xf9   : > { %v585_v15 = vpop.f32.mrf.mxu3  ;;  %v489_v17 = vpop.f32.mrf.mxu1 }
  0xfa   : > { %v490_v19 = vadd.f32 %v489_v17, %v440_v16  ;;  %v586_v24 = vadd.f32 %v585_v15, %v536_v14 }
  0xfc   : > { %v619_v20 = vpack.c.bf16 %v490_v19, %v488_v18 }
  0xfe   : > { %841 = vmatmul.bf16.gmra.mxu0 %v619_v20  ;;  %939 = vmatmul.bf16.gmra.mxu2 %v619_v20 }
 0x100   : > { %v538_v21 = vpop.f32.mrf.mxu2  ;;  %v443_v23 = vpop.f32.mrf.mxu0 }
 0x101   : > { %v587_v22 = vpop.f32.mrf.mxu3  ;;  %v492_v26 = vpop.f32.mrf.mxu1 }
 0x102   : > { %v588_v25 = vadd.f32 %v587_v22, %v538_v21  ;;  %v493_v32 = vadd.f32 %v492_v26, %v443_v23 }
 0x104   : > { %v620_v27 = vpack.c.bf16 %v588_v25, %v586_v24 }
 0x106   : > { %890 = vmatmul.bf16.gmra.mxu1 %v620_v27  ;;  %988 = vmatmul.bf16.gmra.mxu3 %v620_v27 }
 0x108   : > { %v541_v28 = vpop.f32.mrf.mxu2  ;;  %v445_v30 = vpop.f32.mrf.mxu0 }
 0x109   : > { %v590_v29 = vpop.f32.mrf.mxu3  ;;  %v494_v31 = vpop.f32.mrf.mxu1 }
 0x10a   : > { %v495_v33 = vadd.f32 %v494_v31, %v445_v30  ;;  %v591_v38 = vadd.f32 %v590_v29, %v541_v28 }
 0x10c   : > { %v621_v34 = vpack.c.bf16 %v495_v33, %v493_v32 }
 0x10e   : > { %846 = vmatmul.bf16.gmra.mxu0 %v621_v34  ;;  %944 = vmatmul.bf16.gmra.mxu2 %v621_v34 }
 0x110   : > { %v543_v35 = vpop.f32.mrf.mxu2  ;;  %v448_v37 = vpop.f32.mrf.mxu0 }
 0x111   : > { %v592_v36 = vpop.f32.mrf.mxu3  ;;  %v497_v40 = vpop.f32.mrf.mxu1 }
 0x112   : > { %v593_v39 = vadd.f32 %v592_v36, %v543_v35  ;;  %v498_v46 = vadd.f32 %v497_v40, %v448_v37 }
 0x114   : > { %v622_v41 = vpack.c.bf16 %v593_v39, %v591_v38 }
 0x116   : > { %895 = vmatmul.bf16.gmra.mxu1 %v622_v41  ;;  %993 = vmatmul.bf16.gmra.mxu3 %v622_v41 }
 0x118   : > { %v546_v42 = vpop.f32.mrf.mxu2  ;;  %v450_v44 = vpop.f32.mrf.mxu0 }
 0x119   : > { %v595_v43 = vpop.f32.mrf.mxu3  ;;  %v499_v45 = vpop.f32.mrf.mxu1 }
 0x11a   : > { %v500_v47 = vadd.f32 %v499_v45, %v450_v44  ;;  %v596_v52 = vadd.f32 %v595_v43, %v546_v42 }
 0x11c   : > { %v623_v48 = vpack.c.bf16 %v500_v47, %v498_v46 }
 0x11e   : > { %851 = vmatmul.bf16.gmra.mxu0 %v623_v48  ;;  %949 = vmatmul.bf16.gmra.mxu2 %v623_v48 }
 0x120   : > { %v548_v49 = vpop.f32.mrf.mxu2  ;;  %v453_v51 = vpop.f32.mrf.mxu0 }
 0x121   : > { %v597_v50 = vpop.f32.mrf.mxu3  ;;  %v502_v54 = vpop.f32.mrf.mxu1 }
 0x122   : > { %v598_v53 = vadd.f32 %v597_v50, %v548_v49  ;;  %v503_v60 = vadd.f32 %v502_v54, %v453_v51 }
 0x124   : > { %v624_v55 = vpack.c.bf16 %v598_v53, %v596_v52 }
 0x126   : > { %900 = vmatmul.bf16.gmra.mxu1 %v624_v55  ;;  %998 = vmatmul.bf16.gmra.mxu3 %v624_v55 }
 0x128   : > { %v551_v56 = vpop.f32.mrf.mxu2  ;;  %v455_v58 = vpop.f32.mrf.mxu0 }
 0x129   : > { %v600_v57 = vpop.f32.mrf.mxu3  ;;  %v504_v59 = vpop.f32.mrf.mxu1 }
 0x12a   : > { %v505_v61 = vadd.f32 %v504_v59, %v455_v58  ;;  %v601_v2 = vadd.f32 %v600_v57, %v551_v56 }
 0x12c   : > { %v625_v62 = vpack.c.bf16 %v505_v61, %v503_v60 }
 0x12e   : > { %856 = vmatmul.bf16.gmra.mxu0 %v625_v62  ;;  %954 = vmatmul.bf16.gmra.mxu2 %v625_v62 }
 0x130   : > { %v553_v63 = vpop.f32.mrf.mxu2  ;;  %v458_v1 = vpop.f32.mrf.mxu0 }
 0x131   : > { %v602_v0 = vpop.f32.mrf.mxu3  ;;  %v507_v4 = vpop.f32.mrf.mxu1 }
 0x132   : > { %v603_v3 = vadd.f32 %v602_v0, %v553_v63  ;;  %v508_v10 = vadd.f32 %v507_v4, %v458_v1 }
 0x134   : > { %v626_v5 = vpack.c.bf16 %v603_v3, %v601_v2 }
 0x136   : > { %905 = vmatmul.bf16.gmra.mxu1 %v626_v5  ;;  %1003 = vmatmul.bf16.gmra.mxu3 %v626_v5 }
 0x138   : > { %v556_v6 = vpop.f32.mrf.mxu2  ;;  %v460_v8 = vpop.f32.mrf.mxu0 }
 0x139   : > { %v605_v7 = vpop.f32.mrf.mxu3  ;;  %v509_v9 = vpop.f32.mrf.mxu1 }
 0x13a   : > { %v510_v11 = vadd.f32 %v509_v9, %v460_v8  ;;  %v606_v16 = vadd.f32 %v605_v7, %v556_v6 }
 0x13c   : > { %v627_v12 = vpack.c.bf16 %v510_v11, %v508_v10 }
 0x13e   : > { %861 = vmatmul.bf16.gmra.mxu0 %v627_v12  ;;  %959 = vmatmul.bf16.gmra.mxu2 %v627_v12 }
 0x140   : > { %v558_v13 = vpop.f32.mrf.mxu2  ;;  %v463_v15 = vpop.f32.mrf.mxu0 }
 0x141   : > { %v607_v14 = vpop.f32.mrf.mxu3  ;;  %v512_v18 = vpop.f32.mrf.mxu1 }
 0x142   : > { %v608_v17 = vadd.f32 %v607_v14, %v558_v13  ;;  %v513_v24 = vadd.f32 %v512_v18, %v463_v15 }
 0x144   : > { %v628_v19 = vpack.c.bf16 %v608_v17, %v606_v16 }
 0x146   : > { %910 = vmatmul.bf16.gmra.mxu1 %v628_v19  ;;  %1008 = vmatmul.bf16.gmra.mxu3 %v628_v19 }
 0x148   : > { %v561_v20 = vpop.f32.mrf.mxu2  ;;  %v465_v22 = vpop.f32.mrf.mxu0 }
 0x149   : > { %v610_v21 = vpop.f32.mrf.mxu3  ;;  %v514_v23 = vpop.f32.mrf.mxu1 }
 0x14a   : > { %v515_v25 = vadd.f32 %v514_v23, %v465_v22  ;;  %v611_v29 = vadd.f32 %v610_v21, %v561_v20 }
 0x14c   : > { %v629_v26 = vpack.c.bf16 %v515_v25, %v513_v24 }
 0x14e   : > { %866 = vmatmul.bf16.gmra.mxu0 %v629_v26  ;;  %964 = vmatmul.bf16.gmra.mxu2 %v629_v26 }
 0x150   : > { %v563_v27 = vpop.f32.mrf.mxu2 }
 0x151   : > { %v612_v28 = vpop.f32.mrf.mxu3 }
 0x152   : > { %v613_v30 = vadd.f32 %v612_v28, %v563_v27 }
 0x154   : > { %v630_v31 = vpack.c.bf16 %v613_v30, %v611_v29 }
 0x156   : > { %915 = vmatmul.bf16.gmra.mxu1 %v630_v31  ;;  %1013 = vmatmul.bf16.gmra.mxu3 %v630_v31 }
 0x15b   : > { %v832_v32 = vpop.f32.mrf.mxu0 }
 0x161   : > { %v930_v33 = vpop.f32.mrf.mxu2 }
 0x163   : > { %v881_v34 = vpop.f32.mrf.mxu1  ;;  %v834_v36 = vpop.f32.mrf.mxu0 }
 0x164   : > { %v882_v35 = vadd.f32 %v881_v34, %v832_v32 }
 0x166   : > { %1019 = vst [vmem:[%s1836_s23] sm:$0xff] %v882_v35 }
 0x169   : > { %v979_v37 = vpop.f32.mrf.mxu3  ;;  %v932_v39 = vpop.f32.mrf.mxu2 }
 0x16a   : > { %v980_v38 = vadd.f32 %v979_v37, %v930_v33 }
 0x16b   : > { %v883_v40 = vpop.f32.mrf.mxu1  ;;  %v837_v42 = vpop.f32.mrf.mxu0 }
 0x16c   : > { %1020 = vst [vmem:[%s1836_s23 + $0x8] sm:$0xff] %v980_v38  ;;  %v884_v41 = vadd.f32 %v883_v40, %v834_v36 }
 0x16e   : > { %1021 = vst [vmem:[%s1836_s23 + $0x10] sm:$0xff] %v884_v41 }
 0x171   : > { %v981_v43 = vpop.f32.mrf.mxu3  ;;  %v935_v45 = vpop.f32.mrf.mxu2 }
 0x172   : > { %v982_v44 = vadd.f32 %v981_v43, %v932_v39 }
 0x173   : > { %v886_v46 = vpop.f32.mrf.mxu1  ;;  %v839_v48 = vpop.f32.mrf.mxu0 }
 0x174   : > { %1022 = vst [vmem:[%s1836_s23 + $0x18] sm:$0xff] %v982_v44  ;;  %v887_v47 = vadd.f32 %v886_v46, %v837_v42 }
 0x176   : > { %1023 = vst [vmem:[%s1836_s23 + $0x20] sm:$0xff] %v887_v47 }
 0x179   : > { %v984_v49 = vpop.f32.mrf.mxu3  ;;  %v937_v51 = vpop.f32.mrf.mxu2 }
 0x17a   : > { %v985_v50 = vadd.f32 %v984_v49, %v935_v45 }
 0x17b   : > { %v888_v52 = vpop.f32.mrf.mxu1  ;;  %v842_v54 = vpop.f32.mrf.mxu0 }
 0x17c   : > { %1024 = vst [vmem:[%s1836_s23 + $0x28] sm:$0xff] %v985_v50  ;;  %v889_v53 = vadd.f32 %v888_v52, %v839_v48 }
 0x17e   : > { %1025 = vst [vmem:[%s1836_s23 + $0x30] sm:$0xff] %v889_v53 }
 0x181   : > { %v986_v55 = vpop.f32.mrf.mxu3  ;;  %v940_v57 = vpop.f32.mrf.mxu2 }
 0x182   : > { %v987_v56 = vadd.f32 %v986_v55, %v937_v51 }
 0x183   : > { %v891_v58 = vpop.f32.mrf.mxu1  ;;  %v844_v60 = vpop.f32.mrf.mxu0 }
 0x184   : > { %1026 = vst [vmem:[%s1836_s23 + $0x38] sm:$0xff] %v987_v56  ;;  %v892_v59 = vadd.f32 %v891_v58, %v842_v54 }
 0x186   : > { %1027 = vst [vmem:[%s1836_s23 + $0x40] sm:$0xff] %v892_v59 }
 0x189   : > { %v989_v61 = vpop.f32.mrf.mxu3  ;;  %v942_v63 = vpop.f32.mrf.mxu2 }
 0x18a   : > { %v990_v62 = vadd.f32 %v989_v61, %v940_v57 }
 0x18b   : > { %v893_v0 = vpop.f32.mrf.mxu1  ;;  %v847_v2 = vpop.f32.mrf.mxu0 }
 0x18c   : > { %1028 = vst [vmem:[%s1836_s23 + $0x48] sm:$0xff] %v990_v62  ;;  %v894_v1 = vadd.f32 %v893_v0, %v844_v60 }
 0x18e   : > { %1029 = vst [vmem:[%s1836_s23 + $0x50] sm:$0xff] %v894_v1 }
 0x191   : > { %v991_v3 = vpop.f32.mrf.mxu3  ;;  %v945_v5 = vpop.f32.mrf.mxu2 }
 0x192   : > { %v992_v4 = vadd.f32 %v991_v3, %v942_v63 }
 0x193   : > { %v896_v6 = vpop.f32.mrf.mxu1  ;;  %v849_v8 = vpop.f32.mrf.mxu0 }
 0x194   : > { %1030 = vst [vmem:[%s1836_s23 + $0x58] sm:$0xff] %v992_v4  ;;  %v897_v7 = vadd.f32 %v896_v6, %v847_v2 }
 0x196   : > { %1031 = vst [vmem:[%s1836_s23 + $0x60] sm:$0xff] %v897_v7 }
 0x199   : > { %v994_v9 = vpop.f32.mrf.mxu3  ;;  %v947_v11 = vpop.f32.mrf.mxu2 }
 0x19a   : > { %v995_v10 = vadd.f32 %v994_v9, %v945_v5 }
 0x19b   : > { %v898_v12 = vpop.f32.mrf.mxu1  ;;  %v852_v14 = vpop.f32.mrf.mxu0 }
 0x19c   : > { %1032 = vst [vmem:[%s1836_s23 + $0x68] sm:$0xff] %v995_v10  ;;  %v899_v13 = vadd.f32 %v898_v12, %v849_v8 }
 0x19e   : > { %1033 = vst [vmem:[%s1836_s23 + $0x70] sm:$0xff] %v899_v13 }
 0x1a1   : > { %v996_v15 = vpop.f32.mrf.mxu3  ;;  %v950_v17 = vpop.f32.mrf.mxu2 }
 0x1a2   : > { %v997_v16 = vadd.f32 %v996_v15, %v947_v11 }
 0x1a3   : > { %v901_v18 = vpop.f32.mrf.mxu1  ;;  %v854_v20 = vpop.f32.mrf.mxu0 }
 0x1a4   : > { %1034 = vst [vmem:[%s1836_s23 + $0x78] sm:$0xff] %v997_v16  ;;  %v902_v19 = vadd.f32 %v901_v18, %v852_v14 }
 0x1a6   : > { %1035 = vst [vmem:[%s1836_s23 + $0x80] sm:$0xff] %v902_v19 }
 0x1a9   : > { %v999_v21 = vpop.f32.mrf.mxu3  ;;  %v952_v23 = vpop.f32.mrf.mxu2 }
 0x1aa   : > { %v1000_v22 = vadd.f32 %v999_v21, %v950_v17 }
 0x1ab   : > { %v903_v24 = vpop.f32.mrf.mxu1  ;;  %v857_v26 = vpop.f32.mrf.mxu0 }
 0x1ac   : > { %1036 = vst [vmem:[%s1836_s23 + $0x88] sm:$0xff] %v1000_v22  ;;  %v904_v25 = vadd.f32 %v903_v24, %v854_v20 }
 0x1ae   : > { %1037 = vst [vmem:[%s1836_s23 + $0x90] sm:$0xff] %v904_v25 }
 0x1b1   : > { %v1001_v27 = vpop.f32.mrf.mxu3  ;;  %v955_v29 = vpop.f32.mrf.mxu2 }
 0x1b2   : > { %v1002_v28 = vadd.f32 %v1001_v27, %v952_v23 }
 0x1b3   : > { %v906_v30 = vpop.f32.mrf.mxu1  ;;  %v859_v32 = vpop.f32.mrf.mxu0 }
 0x1b4   : > { %1038 = vst [vmem:[%s1836_s23 + $0x98] sm:$0xff] %v1002_v28  ;;  %v907_v31 = vadd.f32 %v906_v30, %v857_v26 }
 0x1b6   : > { %1039 = vst [vmem:[%s1836_s23 + $0xa0] sm:$0xff] %v907_v31 }
 0x1b9   : > { %v1004_v33 = vpop.f32.mrf.mxu3  ;;  %v957_v35 = vpop.f32.mrf.mxu2 }
 0x1ba   : > { %v1005_v34 = vadd.f32 %v1004_v33, %v955_v29 }
 0x1bb   : > { %v908_v36 = vpop.f32.mrf.mxu1  ;;  %v862_v38 = vpop.f32.mrf.mxu0 }
 0x1bc   : > { %1040 = vst [vmem:[%s1836_s23 + $0xa8] sm:$0xff] %v1005_v34  ;;  %v909_v37 = vadd.f32 %v908_v36, %v859_v32 }
 0x1be   : > { %1041 = vst [vmem:[%s1836_s23 + $0xb0] sm:$0xff] %v909_v37 }
 0x1c1   : > { %v1006_v39 = vpop.f32.mrf.mxu3  ;;  %v960_v42 = vpop.f32.mrf.mxu2 }
 0x1c2   : > { %v1007_v40 = vadd.f32 %v1006_v39, %v957_v35 }
 0x1c3   : > { %v911_v41 = vpop.f32.mrf.mxu1  ;;  %v864_v44 = vpop.f32.mrf.mxu0 }
 0x1c4   : > { %1042 = vst [vmem:[%s1836_s23 + $0xb8] sm:$0xff] %v1007_v40  ;;  %v912_v43 = vadd.f32 %v911_v41, %v862_v38 }
 0x1c6   : > { %1043 = vst [vmem:[%s1836_s23 + $0xc0] sm:$0xff] %v912_v43 }
 0x1c9   : > { %v1009_v45 = vpop.f32.mrf.mxu3  ;;  %v962_v49 = vpop.f32.mrf.mxu2 }
 0x1ca   : > { %v1010_v46 = vadd.f32 %v1009_v45, %v960_v42 }
 0x1cb   : > { %v913_v47 = vpop.f32.mrf.mxu1  ;;  %v867_v50 = vpop.f32.mrf.mxu0 }
 0x1cc   : > { %1044 = vst [vmem:[%s1836_s23 + $0xc8] sm:$0xff] %v1010_v46  ;;  %v914_v48 = vadd.f32 %v913_v47, %v864_v44 }
 0x1ce   : > { %1045 = vst [vmem:[%s1836_s23 + $0xd0] sm:$0xff] %v914_v48 }
 0x1d1   : > { %v1011_v51 = vpop.f32.mrf.mxu3  ;;  %v965_v55 = vpop.f32.mrf.mxu2 }
 0x1d2   : > { %v1012_v52 = vadd.f32 %v1011_v51, %v962_v49 }
 0x1d3   : > { %v916_v53 = vpop.f32.mrf.mxu1  ;;  %v869_v58 = vpop.f32.mrf.mxu0 }
 0x1d4   : > { %1046 = vst [vmem:[%s1836_s23 + $0xd8] sm:$0xff] %v1012_v52  ;;  %v917_v54 = vadd.f32 %v916_v53, %v867_v50 }
 0x1d6   : > { %1047 = vst [vmem:[%s1836_s23 + $0xe0] sm:$0xff] %v917_v54 }
 0x1d9   : > { %v1014_v56 = vpop.f32.mrf.mxu3  ;;  %v967_v61 = vpop.f32.mrf.mxu2 }
 0x1da   : > { %v1015_v57 = vadd.f32 %v1014_v56, %v965_v55 }
 0x1db   : > { %v918_v59 = vpop.f32.mrf.mxu1 }
 0x1dc   : > { %1048 = vst [vmem:[%s1836_s23 + $0xe8] sm:$0xff] %v1015_v57  ;;  %v919_v60 = vadd.f32 %v918_v59, %v869_v58 }
 0x1de   : > { %1049 = vst [vmem:[%s1836_s23 + $0xf0] sm:$0xff] %v919_v60 }
 0x1e1   : > { %v1016_v62 = vpop.f32.mrf.mxu3 }
 0x1e2   : > { %v1017_v63 = vadd.f32 %v1016_v62, %v967_v61 }
 0x1e4   : > { %1050 = vst [vmem:[%s1836_s23 + $0xf8] sm:$0xff] %v1017_v63 }
 0x1e5   : > { %1614 = shalt.err (!%p1611_p10)
}
 0x1e6   : > { %s1665_s20 = smov 256   ;;  %s1666_s27 = smov 16  }
 0x1e7   : > { %1434 = dma.vmem_to_hbm [thread:$0]  (%p1759_p5), %s1066_s30, 4096, %s1068_s4, %s1052_s16, %s1665_s20, %s1665_s20, %s1666_s27  }
 0x1e8 PF: > { %s1082_s5 = sand.u32 1, %s1645_s12   ;;  %p1913_p12 = scmp.ge.s32.totalorder %s1657_s15, 2 }
 0x1e9   : > { %s1083_s18 = scalar_lea.sflag [#allocation4], %s1082_s5 }
 0x1ea   : > { %p1448_p13 = pnand %p1913_p12, %p1722_p6 }
 0x1ec   : > { %p1449_p0 = pneg %p1448_p13 }
 0x1ee   : > { %1640 = dma.done.wait (%p1449_p0), %s1083_s18, 4096  }
 0x1ef   : > { %1642 = vsyncadd (%p1449_p0), %s1083_s18, 4294963200  ;;  %p17_p3 = scmp.ge.s32.totalorder %s1746_s8, 4   ;;  %s1914_s12 = smov %s1649_s13 }
 0x1f0   : > { %s1915_s13 = smov %s1653_s14  ;;  %s1916_s14 = smov %s1755_s11 }
 0x1f1   : > { %s1917_s15 = smov %s1746_s8  ;;  %19 = sbr.rel (!%p17_p3) target bundleno = 6 (0x6), region = 85 }
 0x1f6   :  { %1089 = vsyncpa [#allocation3], 1 }
 0x1f7   :  { %1091 = vsyncpa [#allocation3 + $0x1], 1 }
 0x1f8   :  { %1092 = vsyncpa [#allocation6], 1 }
 0x1f9   :  { %1093 = vsyncpa [#allocation4], 1 }
 0x1fa   :  { %1095 = vsyncpa [#allocation4 + $0x1], 1 }

</bundles_post_ra>
